<compile_context>
chip_gen: v5e
topology: v5e:2x2
jax: 0.10.0
libtpu: 0.0.40
codegen_flags: <defaults>
</compile_context>

<pallas_src>
import jax
import jax.numpy as jnp
from jax.experimental import pallas as pl
from jax.experimental.pallas import tpu as pltpu

# ---- module hyper-parameters (small, consistent with the forward pass) ----
B = 2
INPUT_DIM = 16
HIDDEN_DIM = 32
OUTPUT_DIM = 4

LANE = 128      # vreg lane width
SUBLANE = 8     # vreg sublane count (f32)


def _round_up(n, m):
    return (n + m - 1) // m * m


# ---- lane/sublane padded sizes ----
BP = _round_up(B, SUBLANE)               # 8   padded batch rows
IN_PAD = _round_up(INPUT_DIM, LANE)      # 128
HID_PAD = _round_up(HIDDEN_DIM, LANE)    # 128
OUT_PAD = _round_up(OUTPUT_DIM, LANE)    # 128

NEG_BIG = -1e30  # finite "minus infinity" for padded softmax lanes (never -inf)

# ---- packed-parameter slab layout (all rows sublane-aligned, 128 lanes wide) ----
OFF_W1 = 0                     # rows [0, IN_PAD)         : fc1.weight.T (IN_PAD, HID_PAD)
OFF_B1 = OFF_W1 + IN_PAD       # rows [OFF_B1, +BP)       : fc1.bias replicated x BP
OFF_W2 = OFF_B1 + BP           # rows [OFF_W2, +HID_PAD)  : fc2.weight.T (HID_PAD, OUT_PAD)
OFF_B2 = OFF_W2 + HID_PAD      # rows [OFF_B2, +BP)       : fc2.bias (pad lanes = NEG_BIG), replicated x BP
SLAB_ROWS = OFF_B2 + BP        # 272
SLAB_COLS = LANE               # 128

assert all(o % SUBLANE == 0 for o in (OFF_W1, OFF_B1, OFF_W2, OFF_B2, SLAB_ROWS))


def ann_kernel(x_ref, p_ref, out_ref):
    x = x_ref[...]                                   # (BP, IN_PAD)

    # Full-lane-width, sublane-aligned static slices of the parameter slab.
    w1 = p_ref[OFF_W1:OFF_W1 + IN_PAD, :]            # (IN_PAD, HID_PAD)
    b1 = p_ref[OFF_B1:OFF_B1 + BP, :]                # (BP, HID_PAD)  -- pre-replicated
    w2 = p_ref[OFF_W2:OFF_W2 + HID_PAD, :]           # (HID_PAD, OUT_PAD)
    b2 = p_ref[OFF_B2:OFF_B2 + BP, :]                # (BP, OUT_PAD)  -- pre-replicated

    # fc1 + ReLU  (zero-padded input cols / weight rows contribute nothing)
    h = jnp.dot(x, w1, preferred_element_type=jnp.float32) + b1
    h = jnp.maximum(h, 0.0)                          # (BP, HID_PAD)

    # fc2 (padded output lanes: weight cols are 0, bias lanes are -1e30)
    logits = jnp.dot(h, w2, preferred_element_type=jnp.float32) + b2  # (BP, OUT_PAD)

    # Numerically stable softmax over the full padded lane width.
    # Padded lanes give exp(-1e30 - m) == 0, so the result equals softmax over
    # the real OUTPUT_DIM columns.  Exact division (tolerance-critical).
    m = jnp.max(logits, axis=1, keepdims=True)
    e = jnp.exp(logits - m)
    out_ref[...] = e / jnp.sum(e, axis=1, keepdims=True)


_COST = pl.CostEstimate(
    flops=2 * BP * (IN_PAD * HID_PAD + HID_PAD * OUT_PAD),
    transcendentals=BP * OUT_PAD,
    bytes_accessed=4 * (BP * IN_PAD + SLAB_ROWS * SLAB_COLS + BP * OUT_PAD),
)


@jax.jit
def ann_forward(x, packed_params):
    b = x.shape[0]
    assert b <= BP, "grow BP / add a batch grid axis for larger batches"
    # Lane/sublane pad the activations host-side (cheap layout plumbing).
    x_p = jnp.zeros((BP, IN_PAD), jnp.float32).at[:b, :INPUT_DIM].set(x)

    out_p = pl.pallas_call(
        ann_kernel,
        out_shape=jax.ShapeDtypeStruct((BP, OUT_PAD), jnp.float32),
        in_specs=[pl.BlockSpec(memory_space=pltpu.MemorySpace.VMEM),
                  pl.BlockSpec(memory_space=pltpu.MemorySpace.VMEM)],
        out_specs=pl.BlockSpec(memory_space=pltpu.MemorySpace.VMEM),
        cost_estimate=_COST,
    )(x_p, packed_params)

    return out_p[:b, :OUTPUT_DIM]


def pack_params(w1, b1, w2, b2):
    """Pack PyTorch-convention params into one lane-dense, pre-transposed slab."""
    p = jnp.zeros((SLAB_ROWS, SLAB_COLS), jnp.float32)
    # fc1: weight.T in the top-left corner, zero padding elsewhere.
    p = p.at[OFF_W1:OFF_W1 + INPUT_DIM, :HIDDEN_DIM].set(w1.T)
    # fc1 bias, replicated across BP sublanes (padded hidden lanes stay 0).
    p = p.at[OFF_B1:OFF_B1 + BP, :HIDDEN_DIM].set(jnp.broadcast_to(b1, (BP, HIDDEN_DIM)))
    # fc2: weight.T, zero padding elsewhere.
    p = p.at[OFF_W2:OFF_W2 + HIDDEN_DIM, :OUTPUT_DIM].set(w2.T)
    # fc2 bias: real lanes = bias, padded lanes = large finite negative so the
    # in-kernel softmax over 128 lanes ignores them; replicated across BP rows.
    b2_row = jnp.full((SLAB_COLS,), NEG_BIG, jnp.float32).at[:OUTPUT_DIM].set(b2)
    p = p.at[OFF_B2:OFF_B2 + BP, :].set(jnp.broadcast_to(b2_row, (BP, SLAB_COLS)))
    return p


def make_params(key):
    """Deterministic PyTorch-style (uniform +/- 1/sqrt(fan_in)) init.

    Params kept in the nn.Linear convention: weight (out, in), bias (out,).
    """
    k1, k2, k3, k4 = jax.random.split(key, 4)
    bound1 = 1.0 / float(INPUT_DIM) ** 0.5
    w1 = jax.random.uniform(k1, (HIDDEN_DIM, INPUT_DIM), jnp.float32, -bound1, bound1)
    b1 = jax.random.uniform(k2, (HIDDEN_DIM,), jnp.float32, -bound1, bound1)
    bound2 = 1.0 / float(HIDDEN_DIM) ** 0.5
    w2 = jax.random.uniform(k3, (OUTPUT_DIM, HIDDEN_DIM), jnp.float32, -bound2, bound2)
    b2 = jax.random.uniform(k4, (OUTPUT_DIM,), jnp.float32, -bound2, bound2)
    return w1, b1, w2, b2


def reference_forward(x, w1, b1, w2, b2):
    """Pure-JAX reference matching the PyTorch forward."""
    h = jax.nn.relu(x @ w1.T + b1)
    logits = h @ w2.T + b2
    return jax.nn.softmax(logits, axis=1)


if __name__ == "__main__":
    root = jax.random.PRNGKey(0)
    k_x, k_p = jax.random.split(root)
    x = jax.random.normal(k_x, (B, INPUT_DIM), jnp.float32)
    w1, b1, w2, b2 = make_params(k_p)

    packed = jax.block_until_ready(pack_params(w1, b1, w2, b2))  # host-side, once

    out = jax.block_until_ready(ann_forward(x, packed))

    ref = reference_forward(x, w1, b1, w2, b2)
    assert out.shape == (B, OUTPUT_DIM)
    assert jnp.allclose(out, ref, atol=1e-5, rtol=1e-5), (out, ref)
    # softmax rows sum to 1
    assert jnp.allclose(jnp.sum(out, axis=1), jnp.ones((B,)), atol=1e-5)

    print("KERNEL_OK")
</pallas_src>

<mosaic_0001>
module attributes {stable_mosaic.version = 11 : i64} {
  func.func @ann_kernel(%arg0: memref<8x128xf32, #tpu.memory_space<vmem>>, %arg1: memref<272x128xf32, #tpu.memory_space<vmem>>, %arg2: memref<8x128xf32, #tpu.memory_space<vmem>>) attributes {dimension_semantics = [], scalar_prefetch = 0 : i64, scratch_operands = 0 : i64, tpu.core_type = #tpu.core_type<tc>} {
    %c0 = arith.constant 0 : index
    %c0_0 = arith.constant 0 : index
    %0 = vector.load %arg0[%c0, %c0_0] : memref<8x128xf32, #tpu.memory_space<vmem>>, vector<8x128xf32>
    %c0_1 = arith.constant 0 : index
    %c0_2 = arith.constant 0 : index
    %1 = vector.load %arg1[%c0_1, %c0_2] : memref<272x128xf32, #tpu.memory_space<vmem>>, vector<128x128xf32>
    %c128 = arith.constant 128 : index
    %c0_3 = arith.constant 0 : index
    %2 = vector.load %arg1[%c128, %c0_3] : memref<272x128xf32, #tpu.memory_space<vmem>>, vector<8x128xf32>
    %c136 = arith.constant 136 : index
    %c0_4 = arith.constant 0 : index
    %3 = vector.load %arg1[%c136, %c0_4] : memref<272x128xf32, #tpu.memory_space<vmem>>, vector<128x128xf32>
    %c264 = arith.constant 264 : index
    %c0_5 = arith.constant 0 : index
    %4 = vector.load %arg1[%c264, %c0_5] : memref<272x128xf32, #tpu.memory_space<vmem>>, vector<8x128xf32>
    %cst = arith.constant dense<0.000000e+00> : vector<8x128xf32>
    %5 = tpu.matmul %0, %1, %cst {dimension_numbers = #tpu.dot_dimension_numbers<[1], [0], [0], [1], [0, 0, 1, 1], [], []>} : vector<8x128xf32>, vector<128x128xf32>, vector<8x128xf32> -> vector<8x128xf32>
    %6 = arith.addf %5, %2 : vector<8x128xf32>
    %cst_6 = arith.constant 0.000000e+00 : f32
    %7 = vector.broadcast %cst_6 : f32 to vector<8x128xf32>
    %8 = arith.maximumf %6, %7 : vector<8x128xf32>
    %cst_7 = arith.constant dense<0.000000e+00> : vector<8x128xf32>
    %9 = tpu.matmul %8, %3, %cst_7 {dimension_numbers = #tpu.dot_dimension_numbers<[1], [0], [0], [1], [0, 0, 1, 1], [], []>} : vector<8x128xf32>, vector<128x128xf32>, vector<8x128xf32> -> vector<8x128xf32>
    %10 = arith.addf %9, %4 : vector<8x128xf32>
    %cst_8 = arith.constant dense<0xFF800000> : vector<8xf32>
    %11 = vector.multi_reduction <maximumf>, %10, %cst_8 [1] : vector<8x128xf32> to vector<8xf32>
    %12 = vector.shape_cast %11 : vector<8xf32> to vector<8x1xf32>
    %13 = vector.broadcast %12 : vector<8x1xf32> to vector<8x128xf32>
    %14 = arith.subf %10, %13 : vector<8x128xf32>
    %15 = math.exp %14 : vector<8x128xf32>
    %cst_9 = arith.constant dense<0.000000e+00> : vector<8xf32>
    %16 = vector.multi_reduction <add>, %15, %cst_9 [1] : vector<8x128xf32> to vector<8xf32>
    %17 = vector.shape_cast %16 : vector<8xf32> to vector<8x1xf32>
    %18 = vector.broadcast %17 : vector<8x1xf32> to vector<8x128xf32>
    %19 = arith.divf %15, %18 : vector<8x128xf32>
    %c0_10 = arith.constant 0 : index
    %c0_11 = arith.constant 0 : index
    %20 = vector.load %arg2[%c0_10, %c0_11] : memref<8x128xf32, #tpu.memory_space<vmem>>, vector<8x128xf32>
    tpu.vector_store %arg2[%c0_10, %c0_11], %19 {strides = array<i32>} : memref<8x128xf32, #tpu.memory_space<vmem>>, vector<8x128xf32>,
    return
  }
}

</mosaic_0001>

<bundles_post_ra>
// kernel: ann_forward.1
= control target key start
LH: loop header
LB: loop body
LE: loop exit
PB: predicated region body
PF: predicated region fallthrough
CT: control target
= control target key end

     0   :  { %7 = vsyncpa [#allocation3], 0  ;;  %s164_s12 = smov [#allocation2]   ;;  %s165_s14 = smov 128   ;;  %s191_s0 = inlined_call_operand.vmem [shape: f32[8,128], index: 0, kind: input, shape index: {}]   ;;  %s192_s1 = inlined_call_operand.hbm [shape: f32[272,128], index: 1, kind: input, shape index: {}]   ;;  %s193_s2 = inlined_call_operand.vmem [shape: f32[8,128], index: 2, kind: output, shape index: {}]  }
   0x1   :  { %s14_s11 = sshll.u32 %s192_s1, 4  ;;  %s16_s13 = sshll.u32 %s164_s12, 4  ;;  %s15_s11 = int_to_ptr.hbm [resolvable:$true] %s14_s11  ;;  %s17_s13 = int_to_ptr.vmem [resolvable:$true] %s16_s13 }
   0x2   :  { %s166_s15 = smov 8  }
   0x3   :  { %22 = dma.hbm_to_vmem [thread:$0]  %s15_s11, 4352, %s17_s13, [#allocation3], %s165_s14, %s165_s14, %s166_s15  }
   0x4   :  { %162 = dma.done.wait [#allocation3], 4352  }
   0x5   :  { %163 = vsyncadd [#allocation3], 4294962944  ;;  %v43_v0 = vld [vmem:[#allocation2 + $0x78] sm:$0xff]  ;;  %v42_v1 = vld [vmem:[#allocation2 + $0x70] sm:$0xff] }
   0x6   :  { %62 = vmatpush.msra.mxu0 %v43_v0  ;;  %v41_v2 = vld [vmem:[#allocation2 + $0x68] sm:$0xff]  ;;  %v40_v3 = vld [vmem:[#allocation2 + $0x60] sm:$0xff]  ;;  %v39_v5 = vld [vmem:[#allocation2 + $0x58] sm:$0xff] }
   0x7   :  { %v60_v4 = vld [vmem:[#allocation2 + $0x100] sm:$0xff]  ;;  %v59_v6 = vld [vmem:[#allocation2 + $0xf8] sm:$0xff]  ;;  %v58_v7 = vld [vmem:[#allocation2 + $0xf0] sm:$0xff] }
   0x8   :  { %63 = vmatpush.msra.mxu0 %v42_v1  ;;  %83 = vmatpush.msra.mxu1 %v60_v4  ;;  %v38_v8 = vld [vmem:[#allocation2 + $0x50] sm:$0xff]  ;;  %v57_v9 = vld [vmem:[#allocation2 + $0xe8] sm:$0xff]  ;;  %v56_v11 = vld [vmem:[#allocation2 + $0xe0] sm:$0xff] }
   0x9   :  { %v37_v10 = vld [vmem:[#allocation2 + $0x48] sm:$0xff]  ;;  %v36_v12 = vld [vmem:[#allocation2 + $0x40] sm:$0xff]  ;;  %v55_v13 = vld [vmem:[#allocation2 + $0xd8] sm:$0xff] }
   0xa   :  { %64 = vmatpush.msra.mxu0 %v41_v2  ;;  %84 = vmatpush.msra.mxu1 %v59_v6  ;;  %v35_v14 = vld [vmem:[#allocation2 + $0x38] sm:$0xff]  ;;  %v54_v15 = vld [vmem:[#allocation2 + $0xd0] sm:$0xff]  ;;  %v53_v17 = vld [vmem:[#allocation2 + $0xc8] sm:$0xff] }
   0xb   :  { %v34_v16 = vld [vmem:[#allocation2 + $0x30] sm:$0xff]  ;;  %v33_v18 = vld [vmem:[#allocation2 + $0x28] sm:$0xff]  ;;  %v52_v19 = vld [vmem:[#allocation2 + $0xc0] sm:$0xff] }
   0xc   :  { %65 = vmatpush.msra.mxu0 %v40_v3  ;;  %85 = vmatpush.msra.mxu1 %v58_v7  ;;  %v32_v20 = vld [vmem:[#allocation2 + $0x20] sm:$0xff]  ;;  %v51_v21 = vld [vmem:[#allocation2 + $0xb8] sm:$0xff]  ;;  %v50_v23 = vld [vmem:[#allocation2 + $0xb0] sm:$0xff] }
   0xd   :  { %v31_v22 = vld [vmem:[#allocation2 + $0x18] sm:$0xff]  ;;  %v30_v24 = vld [vmem:[#allocation2 + $0x10] sm:$0xff]  ;;  %v49_v25 = vld [vmem:[#allocation2 + $0xa8] sm:$0xff] }
   0xe   :  { %66 = vmatpush.msra.mxu0 %v39_v5  ;;  %86 = vmatpush.msra.mxu1 %v57_v9  ;;  %v29_v26 = vld [vmem:[#allocation2 + $0x8] sm:$0xff]  ;;  %v48_v27 = vld [vmem:[#allocation2 + $0xa0] sm:$0xff]  ;;  %v47_v30 = vld [vmem:[#allocation2 + $0x98] sm:$0xff] }
   0xf   :  { %v28_v28 = vld [vmem:[#allocation2] sm:$0xff]  ;;  %v46_v31 = vld [vmem:[#allocation2 + $0x90] sm:$0xff]  ;;  %v45_v32 = vld [vmem:[#allocation2 + $0x88] sm:$0xff] }
  0x10   :  { %67 = vmatpush.msra.mxu0 %v38_v8  ;;  %87 = vmatpush.msra.mxu1 %v56_v11  ;;  %v27_v29 = vld [vmem:[%s191_s0] sm:$0xff]  ;;  %v61_v37 = vld [vmem:[#allocation2 + $0x108] sm:$0xff] }
  0x11   :  { %v44_v33 = vld [vmem:[#allocation2 + $0x80] sm:$0xff] }
  0x12   :  { %68 = vmatpush.msra.mxu0 %v37_v10  ;;  %88 = vmatpush.msra.mxu1 %v55_v13 }
  0x14   :  { %69 = vmatpush.msra.mxu0 %v36_v12  ;;  %89 = vmatpush.msra.mxu1 %v54_v15 }
  0x16   :  { %70 = vmatpush.msra.mxu0 %v35_v14  ;;  %90 = vmatpush.msra.mxu1 %v53_v17 }
  0x18   :  { %71 = vmatpush.msra.mxu0 %v34_v16  ;;  %91 = vmatpush.msra.mxu1 %v52_v19 }
  0x1a   :  { %72 = vmatpush.msra.mxu0 %v33_v18  ;;  %92 = vmatpush.msra.mxu1 %v51_v21 }
  0x1c   :  { %73 = vmatpush.msra.mxu0 %v32_v20  ;;  %93 = vmatpush.msra.mxu1 %v50_v23 }
  0x1e   :  { %74 = vmatpush.msra.mxu0 %v31_v22  ;;  %94 = vmatpush.msra.mxu1 %v49_v25 }
  0x20   :  { %75 = vmatpush.msra.mxu0 %v30_v24  ;;  %95 = vmatpush.msra.mxu1 %v48_v27 }
  0x22   :  { %76 = vmatpush.msra.mxu0 %v29_v26  ;;  %96 = vmatpush.msra.mxu1 %v47_v30 }
  0x24   :  { %77 = vmatpush.msra.mxu0 %v28_v28  ;;  %97 = vmatpush.msra.mxu1 %v46_v31 }
  0x25   :  { %78 = vmatmul.f32.vlgmr.msra.gmra.mxu0 %v27_v29 }
  0x26   :  { %98 = vmatpush.msra.mxu1 %v45_v32 }
  0xa2   :  { %v79_v34 = vpop.f32.mrf.mxu0 }
  0xa3   :  { %v80_v35 = vadd.f32 %v79_v34, %v44_v33 }
  0xa5   :  { %v82_v36 = vmax.f32 %v80_v35, 0.0 }
  0xa7   :  { %99 = vmatmul.f32.vlgmr.msra.gmra.mxu1 %v82_v36 }
 0x124   :  { %v100_v38 = vpop.f32.mrf.mxu1 }
 0x125   :  { %v101_v39 = vadd.f32 %v100_v38, %v61_v37 }
 0x127   :  { %103 = vmax.xlane.f32.xlu0 %v101_v39 }
 0x19a   :  { %v104_v40 = vpop.xlane.xlu0 %103 }
 0x19b   :  { %v105_v41 = vsub.f32 %v101_v39, %v104_v40 }
 0x19d   :  { %v106_v42 = vmul.f32 1.442695, %v105_v41 }
 0x19f   :  { %134 = vpow2.f32 %v106_v42 }
 0x1a5   :  { %v135_v43 = vpop.eup %134 }
 0x1a6   :  { %108 = vadd.xlane.f32.xlu0 %v135_v43 }
 0x219   :  { %v109_v44 = vpop.xlane.xlu0 %108 }
 0x21a   :  { %136 = vrcp.f32 %v109_v44  ;;  %v121_v48 = vand.u32 2147483648, %v109_v44  ;;  %v119_v50 = vand.u32 2147483647, %v109_v44  ;;  %vm115_vm1 = vweird.f32 %v109_v44 }
 0x21c   :  { %v122_v52 = vor.u32 1.1754944e-38, %v121_v48  ;;  %vm120_vm3 = vcmp.eq.f32.partialorder %v119_v50, 8.507059e+37 }
 0x220   :  { %v137_v45 = vpop.eup %136 }
 0x221   :  { %v111_v46 = vmul.f32 %v137_v45, %v109_v44  ;;  %vm116_vm0 = vweird.f32 %v137_v45 }
 0x222   :  { %vm117_vm2 = vmor %vm115_vm1, %vm116_vm0 }
 0x223   :  { %v112_v47 = vsub.f32 1.0, %v111_v46 }
 0x225   :  { %v113_v49 = vmul.f32 %v137_v45, %v112_v47 }
 0x227   :  { %v114_v51 = vadd.f32 %v137_v45, %v113_v49 }
 0x229   :  { %v118_v53 = vsel %vm117_vm2, %v137_v45, %v114_v51 }
 0x22a   :  { %v123_v54 = vsel %vm120_vm3, %v122_v52, %v118_v53 }
 0x22b   :  { %v124_v55 = vmul.f32 %v135_v43, %v123_v54 }
 0x22d   :  { %125 = vst [vmem:[%s193_s2] sm:$0xff] %v124_v55 }
 0x22e   :  { %130 = vsyncpa [#allocation3], 1 }

</bundles_post_ra>
